<compile_context>
chip_gen: v7x
topology: tpu7x:2x2x1
jax: 0.10.0
libtpu: 0.0.40
codegen_flags: <defaults>
</compile_context>

<pallas_src>
import functools
import numpy as np
import jax
import jax.numpy as jnp
from jax.experimental import pallas as pl
from jax.experimental.pallas import tpu as pltpu


def _norm_kernel(x_ref, o_ref, *, eps):
    # x_ref / o_ref: (rb, C) — rows are independent, so ragged-tail padding rows
    # are harmless (their writes are dropped by Pallas).
    x = x_ref[...].astype(jnp.float32)
    var = jnp.mean(x * x, axis=-1, keepdims=True)       # XLU row-reduce
    inv = jax.lax.rsqrt(var + eps)                       # EUP (x*rsqrt == x/sqrt to ~1 ulp)
    o_ref[...] = (x * inv).astype(o_ref.dtype)           # VPU, lane-dense store when C % 128 == 0


def _sublane_multiple(dtype):
    itemsize = jnp.dtype(dtype).itemsize
    if itemsize >= 4:
        return 8
    if itemsize == 2:
        return 16
    return 32


def _round_up(x, m):
    return ((x + m - 1) // m) * m


def _pick_row_block(rows, C, dtype, block_byte_budget):
    """Row-block size from a VMEM byte budget, dtype-aware sublane-aligned."""
    sub = _sublane_multiple(dtype)
    itemsize = jnp.dtype(dtype).itemsize
    row_bytes = max(1, C * itemsize)
    rb = max(sub, (block_byte_budget // row_bytes) // sub * sub)
    if rb >= rows:
        # Whole array fits in one block. Split into two sublane-aligned blocks
        # when possible so the "parallel" grid axis shards across both
        # TensorCores on v7x; otherwise use the full-extent block (always legal).
        half = _round_up((rows + 1) // 2, sub)
        rb = half if half < rows else rows
    return rb


def norm(x, eps=1e-12, block_byte_budget=2 * 1024 * 1024):
    """x: (..., C). Normalizes over the last dim, matching the PyTorch Norm module.

    Note: for KB-scale inputs a plain fused XLA expression
    (x * jax.lax.rsqrt(mean(x*x, -1, keepdims=True) + eps)) is faster than any
    pallas_call (fixed launch + pipeline prologue); this wrapper always runs the
    Pallas kernel so the demo exercises it.
    """
    orig_shape = x.shape
    C = orig_shape[-1]
    R = int(np.prod(orig_shape[:-1])) if len(orig_shape) > 1 else 1
    x2 = x.reshape(R, C)

    itemsize = jnp.dtype(x.dtype).itemsize
    rb = _pick_row_block(R, C, x.dtype, block_byte_budget)
    grid = (pl.cdiv(R, rb),)

    # 2x input + 2x output double buffers, plus slack for pipeline bookkeeping.
    block_bytes = rb * C * itemsize
    vmem_needed = int(4 * block_bytes * 1.25)
    vmem_limit = min(max(vmem_needed, 16 * 1024 * 1024), 64 * 1024 * 1024)

    cost = pl.CostEstimate(
        flops=3 * R * C,
        transcendentals=R,
        bytes_accessed=2 * R * C * itemsize,
    )

    out = pl.pallas_call(
        functools.partial(_norm_kernel, eps=eps),
        out_shape=jax.ShapeDtypeStruct((R, C), x.dtype),
        grid_spec=pltpu.PrefetchScalarGridSpec(
            num_scalar_prefetch=0,
            grid=grid,
            in_specs=[pl.BlockSpec((rb, C), lambda r: (r, 0))],
            out_specs=pl.BlockSpec((rb, C), lambda r: (r, 0)),
        ),
        compiler_params=pltpu.CompilerParams(
            dimension_semantics=("parallel",),
            vmem_limit_bytes=vmem_limit,
        ),
        cost_estimate=cost,
    )(x2)
    return out.reshape(orig_shape)


def reference_norm(x, eps=1e-12):
    variance = jnp.mean(x * x, axis=-1, keepdims=True)
    return x / jnp.sqrt(variance + eps)


if __name__ == "__main__":
    # Small shapes consistent with the module's use inside a GCN:
    # batch=2, 16 graph nodes, 128 features normalized over the last dim.
    B, J, C = 2, 16, 128
    eps = 1e-12

    key = jax.random.PRNGKey(0)
    x = jax.random.normal(key, (B, J, C), dtype=jnp.float32)

    out = norm(x, eps=eps)
    out = jax.block_until_ready(out)

    ref = reference_norm(x, eps=eps)
    np.testing.assert_allclose(np.asarray(out), np.asarray(ref), rtol=1e-5, atol=1e-5)

    print("KERNEL_OK")
</pallas_src>

<mosaic_0001>
module attributes {stable_mosaic.version = 11 : i64} {
  func.func @_norm_kernel(%arg0: i32, %arg1: memref<16x128xf32, #tpu.memory_space<vmem>>, %arg2: memref<16x128xf32, #tpu.memory_space<vmem>>) attributes {dimension_semantics = [#tpu.dimension_semantics<parallel>], iteration_bounds = array<i64: 2>, scalar_prefetch = 0 : i64, scratch_operands = 0 : i64, tpu.core_type = #tpu.core_type<tc>, window_params = [{transform_indices = @transform_0, window_bounds = array<i64: 16, 128>}, {transform_indices = @transform_1, window_bounds = array<i64: 16, 128>}]} {
    %c0 = arith.constant 0 : index
    %c0_0 = arith.constant 0 : index
    %0 = vector.load %arg1[%c0, %c0_0] : memref<16x128xf32, #tpu.memory_space<vmem>>, vector<16x128xf32>
    %1 = arith.mulf %0, %0 : vector<16x128xf32>
    %cst = arith.constant dense<0.000000e+00> : vector<16xf32>
    %2 = vector.multi_reduction <add>, %1, %cst [1] : vector<16x128xf32> to vector<16xf32>
    %3 = vector.shape_cast %2 : vector<16xf32> to vector<16x1xf32>
    %cst_1 = arith.constant 1.280000e+02 : f32
    %4 = vector.broadcast %cst_1 : f32 to vector<16x1xf32>
    %5 = arith.divf %3, %4 : vector<16x1xf32>
    %cst_2 = arith.constant 9.99999996E-13 : f32
    %6 = vector.broadcast %cst_2 : f32 to vector<16x1xf32>
    %7 = arith.addf %5, %6 : vector<16x1xf32>
    %8 = math.rsqrt %7 : vector<16x1xf32>
    %9 = vector.broadcast %8 : vector<16x1xf32> to vector<16x128xf32>
    %10 = arith.mulf %0, %9 : vector<16x128xf32>
    %c0_3 = arith.constant 0 : index
    %c0_4 = arith.constant 0 : index
    %11 = vector.load %arg2[%c0_3, %c0_4] : memref<16x128xf32, #tpu.memory_space<vmem>>, vector<16x128xf32>
    tpu.vector_store %arg2[%c0_3, %c0_4], %10 {strides = array<i32>} : memref<16x128xf32, #tpu.memory_space<vmem>>, vector<16x128xf32>,
    return
  }
  func.func @transform_0(%arg0: i32) -> (i32, i32) {
    %c0_i32 = arith.constant 0 : i32
    %c0_i32_0 = arith.constant 0 : i32
    return %arg0, %c0_i32 : i32, i32
  }
  func.func @transform_1(%arg0: i32) -> (i32, i32) {
    %c0_i32 = arith.constant 0 : i32
    %c0_i32_0 = arith.constant 0 : i32
    return %arg0, %c0_i32 : i32, i32
  }
}

</mosaic_0001>

<bundles_post_ra>
// kernel: tpu_custom_call.1
= control target key start
LH: loop header
LB: loop body
LE: loop exit
PB: predicated region body
PF: predicated region fallthrough
CT: control target
= control target key end

     0   :  { %6 = vsyncpa [#allocation3], 0  ;;  %s589_s0 = inlined_call_operand.hbm [shape: f32[32,128], index: 0, kind: input, shape index: {}]   ;;  %s590_s1 = inlined_call_operand.hbm [shape: f32[32,128], index: 1, kind: output, shape index: {}]  }
   0x1   :  { %8 = vsyncpa [#allocation3 + $0x1], 0 }
   0x2   :  { %9 = vsyncpa [#allocation4], 0 }
   0x3   :  { %11 = vsyncpa [#allocation4 + $0x1], 0  ;;  %s427_s6 = smov 0   ;;  %s429_s7 = smov 0  }
   0x4   :  { %s431_s8 = smov 0   ;;  %s433_s9 = smov 0  }
   0x5 LB: > { %s448_s10 = sadd.s32 4294967295, %s409_s9   ;;  %s243_s11 = sadd.s32 4294967294, %s409_s9   ;;  %s409_s9 = sphi %s433_s9, %s603_s9   ;;  %s405_s8 = sphi %s431_s8, %s602_s8   ;;  %s401_s7 = sphi %s429_s7, %s601_s7   ;;  %s397_s6 = sphi %s427_s6, %s600_s6  }
   0x6   : > { %s452_s12 = sadd.s32 1, %s409_s9   ;;  %s24_s13 = sadd.s32 1, %s405_s8 }
   0x7   : > { %s21_s14 = ssub.s32 %s409_s9, %s452_s12  ;;  %p31_p0 = scmp.ne.s32.totalorder %s405_s8, %s401_s7 }
   0x8   : > { %p22_p1 = scmp.eq.s32.totalorder %s21_s14, 0  ;;  %p32_p2 = scmp.eq.s32.totalorder %s409_s9, 0 }
   0x9   : > { %p37_p3 = scmp.ne.s32.totalorder %s401_s7, %s397_s6  ;;  %p38_p4 = scmp.eq.s32.totalorder %s448_s10, 0 }
   0xa   : > { %s464_s15 = scalar_select %p22_p1, %s405_s8, %s24_s13  }
   0xb   : > { %p466_p5 = por %p32_p2, %p31_p0  ;;  %p470_p6 = por %p38_p4, %p37_p3 }
   0xc   : > { %p61_p7 = scmp.eq.s32.totalorder %s448_s10, 1  ;;  %p67_p8 = scmp.eq.s32.totalorder %s243_s11, 1 }
   0xd   : > { %p271_p10 = scmp.lt.s32.totalorder %s409_s9, 2  ;;  %s87_s20 = sand.u32 1, %s405_s8  }
   0xe   : > { %p477_p11 = por %p61_p7, %p31_p0  ;;  %p481_p12 = por %p67_p8, %p37_p3 }
   0xf   : > { %s257_s21 = sshll.u32 %s409_s9, 8  ;;  %s246_s22 = sshll.u32 %s87_s20, 4 }
  0x10   : > { %s594_s18 = scalar_select %p477_p11, 1, 0 }
  0x11   : > { %s595_s19 = scalar_select %p481_p12, 1, 0 }
  0x12   : > { %s490_s25 = scalar_lea.hbm %s589_s0, %s257_s21  ;;  %s91_s26 = scalar_lea.vmem [#allocation2], %s246_s22 }
  0x13   : > { %s98_s27 = sshll.u32 %s91_s26, 4  ;;  %p494_p13 = pnand %p271_p10, %p466_p5  ;;  %s498_s27 = int_to_ptr.vmem [resolvable:$true] %s98_s27 }
  0x14   : > { %s500_s29 = scalar_lea.sflag [#allocation3], %s87_s20  ;;  %s313_s30 = scalar_lea.hbm %s490_s25, 256 }
  0x15   : > { %p314_p0 = scmp.ne.s32.totalorder %s490_s25, %s313_s30  ;;  %p315_p1 = pneg %p494_p13 }
  0x16   : > { %s318_s4 = scalar_lea.hbm %s589_s0, 512  ;;  %p319_p4 = scmp.lt.u32.totalorder %s490_s25, %s589_s0 }
  0x17   : > { %p316_p2 = pnand %p315_p1, %p314_p0  ;;  %p320_p5 = scmp.lt.u32.totalorder %s318_s4, %s313_s30 }
  0x18   : > { %p322_p8 = scmp.lt.u32.totalorder %s313_s30, %s490_s25 }
  0x19   : > { %p317_p3 = pneg %p316_p2  ;;  %p321_p7 = por %p320_p5, %p319_p4 }
  0x1b   : > { %p323_p10 = por %p322_p8, %p321_p7 }
  0x1d   : > { %p324_p9 = pnand %p323_p10, %p317_p3 }
  0x1f   : > { %327 = shalt.err (!%p324_p9)
}
  0x20   : > { %s328_s13 = scalar_lea.vmem %s498_s27, 256  ;;  %s411_s14 = smov [#allocation2]  }
  0x21   : > { %p329_p0 = scmp.ne.s32.totalorder %s498_s27, %s328_s13  ;;  %s333_s16 = sshll.u32 %s411_s14, 4  ;;  %s334_s16 = int_to_ptr.vmem [resolvable:$false] %s333_s16 }
  0x22   : > { %s335_s20 = scalar_lea.vmem %s334_s16, 512  ;;  %p336_p11 = scmp.lt.s32.totalorder %s498_s27, %s334_s16 }
  0x23   : > { %p331_p2 = pnand %p329_p0, %p315_p1  ;;  %p337_p4 = scmp.lt.s32.totalorder %s335_s20, %s328_s13 }
  0x25   : > { %p332_p12 = pneg %p331_p2  ;;  %p338_p5 = por %p337_p4, %p336_p11 }
  0x27   : > { %p339_p7 = pnand %p338_p5, %p332_p12 }
  0x29   : > { %342 = shalt.err (!%p339_p7)
}
  0x2a   : > { %s412_s21 = smov 128   ;;  %s413_s22 = smov 8  }
  0x2b   : > { %266 = dma.hbm_to_vmem [thread:$0]  (!%p494_p13), %s490_s25, 256, %s498_s27, %s500_s29, %s412_s21, %s412_s21, %s413_s22  }
  0x2c   : > { %p249_p9 = scmp.ge.s32.totalorder %s409_s9, 1  ;;  %p106_p1 = scmp.lt.s32.totalorder %s409_s9, 3 }
  0x2e   : > { %p107_p3 = pnand %p249_p9, %p106_p1 }
  0x2f   : > { %s531_s23 = sand.u32 (!%p107_p3), 1, %s401_s7  }
  0x30   : > { %110 = sbr.rel (%p107_p3) target bundleno = 237 (0xed), region = 24  ;;  %s250_s24 = sshll.u32 (!%p107_p3), %s531_s23, 4 }
  0x31   : > { %s113_s26 = scalar_lea.sflag (!%p107_p3), [#allocation3], %s531_s23  ;;  %s116_s30 = scalar_lea.vmem (!%p107_p3), [#allocation2], %s250_s24 }
  0x37   : > { %388 = dma.done.wait (%p470_p6), %s113_s26, 256  }
  0x38   : > { %390 = vsyncadd (%p470_p6), %s113_s26, 4294967040  ;;  %v137_v0 = vld [vmem:[%s116_s30] sm:$0xff]  ;;  %v138_v1 = vld [vmem:[%s116_s30 + $0x8] sm:$0xff]  ;;  %s258_s17 = sshll.u32 %s448_s10, 8  ;;  %s134_s25 = scalar_lea.vmem [#allocation5], %s250_s24 }
  0x39   : > { %v139_v2 = vmul.f32 %v137_v0, %v137_v0  ;;  %v140_v3 = vmul.f32 %v138_v1, %v138_v1  ;;  %s170_s27 = sshll.u32 %s134_s25, 4  ;;  %s543_s2 = scalar_lea.hbm %s590_s1, %s258_s17  ;;  %s545_s27 = int_to_ptr.vmem [resolvable:$true] %s170_s27 }
  0x3a   : > { %s157_s3 = scalar_lea.sflag [#allocation4], %s531_s23  ;;  %s343_s4 = scalar_lea.vmem %s545_s27, 256 }
  0x3b   : > { %141 = vadd.xlane.f32.xlu0 %v139_v2  ;;  %p344_p6 = scmp.ne.s32.totalorder %s545_s27, %s343_s4  ;;  %p597_p11 = scmp.ne.s32.totalorder %s594_s18, 0 }
  0x3c   : > { %s414_s10 = smov [#allocation5]  }
  0x3d   : > { %p345_p12 = pnand %p344_p6, %p597_p11  ;;  %s347_s5 = sshll.u32 %s414_s10, 4  ;;  %s348_s5 = int_to_ptr.vmem [resolvable:$false] %s347_s5 }
  0x3e   : > { %s349_s11 = scalar_lea.vmem %s348_s5, 512  ;;  %p350_p8 = scmp.lt.s32.totalorder %s545_s27, %s348_s5 }
  0x3f   : > { %143 = vadd.xlane.f32.xlu0 %v140_v3  ;;  %p346_p13 = pneg %p345_p12  ;;  %p351_p10 = scmp.lt.s32.totalorder %s349_s11, %s343_s4 }
  0x41   : > { %p352_p0 = por %p351_p10, %p350_p8 }
  0x43   : > { %p353_p2 = pnand %p352_p0, %p346_p13 }
  0xc8   : > { %v142_v4 = vpop.xlane.xlu0 %141 }
  0xc9   : > { %v146_v5 = vmul.f32 0.0078125, %v142_v4 }
  0xcb   : > { %v148_v6 = vadd.f32 1e-12, %v146_v5 }
  0xcc   : > { %v144_v7 = vpop.xlane.xlu0 %143 }
  0xcd   : > { %309 = vrsqrt.f32 %v148_v6  ;;  %v147_v8 = vmul.f32 0.0078125, %v144_v7 }
  0xcf   : > { %v149_v9 = vadd.f32 1e-12, %v147_v8 }
  0xd1   : > { %311 = vrsqrt.f32 %v149_v9 }
  0xd7   : > { %v310_v10 = vpop.eup %309 }
  0xd8   : > { %v152_v11 = vmul.f32 %v310_v10, %v137_v0 }
  0xda   : > { %154 = vst [vmem:[%s134_s25] sm:$0xff] %v152_v11 }
  0xdb   : > { %v312_v12 = vpop.eup %311 }
  0xdc   : > { %v153_v13 = vmul.f32 %v312_v12, %v138_v1 }
  0xde   : > { %155 = vst [vmem:[%s134_s25 + $0x8] sm:$0xff] %v153_v13 }
  0xdf   : > { %356 = shalt.err (!%p353_p2)
}
  0xe0   : > { %s357_s13 = scalar_lea.hbm %s543_s2, 256  ;;  %s361_s20 = scalar_lea.hbm %s590_s1, 512 }
  0xe1   : > { %p358_p4 = scmp.ne.s32.totalorder %s543_s2, %s357_s13  ;;  %p362_p9 = scmp.lt.u32.totalorder %s543_s2, %s590_s1 }
  0xe2   : > { %p363_p1 = scmp.lt.u32.totalorder %s361_s20, %s357_s13  ;;  %p365_p6 = scmp.lt.u32.totalorder %s357_s13, %s543_s2 }
  0xe3   : > { %p359_p5 = pnand %p358_p4, %p597_p11 }
  0xe4   : > { %p364_p3 = por %p363_p1, %p362_p9 }
  0xe5   : > { %p360_p7 = pneg %p359_p5 }
  0xe6   : > { %p366_p12 = por %p365_p6, %p364_p3 }
  0xe8   : > { %p367_p13 = pnand %p366_p12, %p360_p7 }
  0xea   : > { %370 = shalt.err (!%p367_p13)
}
  0xeb   : > { %s415_s24 = smov 128   ;;  %s416_s26 = smov 8  }
  0xec   : > { %261 = dma.vmem_to_hbm [thread:$0]  (%p597_p11), %s545_s27, 256, %s543_s2, %s157_s3, %s415_s24, %s415_s24, %s416_s26  }
  0xed PF: > { %s185_s30 = sand.u32 1, %s397_s6   ;;  %p598_p8 = scmp.ne.s32.totalorder %s595_s19, 0 }
  0xee   : > { %p599_p10 = scmp.ge.s32.totalorder %s409_s9, 2  ;;  %s186_s17 = scalar_lea.sflag [#allocation4], %s185_s30 }
  0xf0   : > { %p268_p0 = pnand %p599_p10, %p598_p8 }
  0xf2   : > { %392 = dma.done.wait (!%p268_p0), %s186_s17, 256  }
  0xf3   : > { %394 = vsyncadd (!%p268_p0), %s186_s17, 4294967040  ;;  %p14_p2 = scmp.ge.s32.totalorder %s452_s12, 4   ;;  %s600_s6 = smov %s401_s7 }
  0xf4   : > { %s601_s7 = smov %s405_s8  ;;  %s602_s8 = smov %s464_s15 }
  0xf5   : > { %s603_s9 = smov %s452_s12  ;;  %16 = sbr.rel (!%p14_p2) target bundleno = 5 (0x5), region = 69 }
  0xfc   :  { %191 = vsyncpa [#allocation3], 1 }
  0xfd   :  { %193 = vsyncpa [#allocation3 + $0x1], 1 }
  0xfe   :  { %194 = vsyncpa [#allocation4], 1 }
  0xff   :  { %196 = vsyncpa [#allocation4 + $0x1], 1 }

</bundles_post_ra>
